<compile_context>
chip_gen: v5e
topology: v5e:2x2
jax: 0.10.0
libtpu: 0.0.40
codegen_flags: <defaults>
</compile_context>

<pallas_src>
import jax
import jax.numpy as jnp
from jax.experimental import pallas as pl
from jax.experimental.pallas import tpu as pltpu

LANE = 128
SUBLANE = 8


# ----------------------------------------------------------------------------- kernel

def decoder_kernel(x_ref, w1_ref, b1_ref, w2_ref, b2_ref, o_ref):
    """One batch tile: relu(x @ W1 + b1) @ W2 + b2, f32 accumulation throughout."""
    tb = x_ref.shape[0]
    # Chunk the rows so the f32 hidden intermediate (row_chunk, Hp) stays vreg-resident
    # for large batch tiles; for TB <= 256 this is a single chunk (no behavior change).
    if tb <= 256:
        row_chunk = tb
    elif tb % 256 == 0:
        row_chunk = 256
    elif tb % 128 == 0:
        row_chunk = 128
    else:
        row_chunk = tb

    mm_dtype = w1_ref.dtype
    for c in range(tb // row_chunk):
        rows = pl.ds(c * row_chunk, row_chunk)
        # l1: (row_chunk, L) @ (L, Hp) on the MXU, f32 accumulation; bias + ReLU in f32.
        h = jnp.dot(x_ref[rows, :].astype(mm_dtype), w1_ref[...],
                    preferred_element_type=jnp.float32)
        h = jnp.maximum(h + b1_ref[...], jnp.float32(0.0))
        # l2: (row_chunk, Hp) @ (Hp, Op); cast activation to MXU dtype, accumulate f32.
        out = jnp.dot(h.astype(w2_ref.dtype), w2_ref[...],
                      preferred_element_type=jnp.float32)
        o_ref[rows, :] = (out + b2_ref[...]).astype(o_ref.dtype)


# ----------------------------------------------------------------------------- helpers

def _round_up(n, m):
    return ((n + m - 1) // m) * m


def _pad2(a, rows, cols):
    pr, pc = rows - a.shape[0], cols - a.shape[1]
    if pr == 0 and pc == 0:
        return a
    return jnp.pad(a, ((0, pr), (0, pc)))


def _resident_spec(shape):
    """Constant-index (VMEM-resident) operand; single-buffered if this JAX supports it."""
    try:
        return pl.BlockSpec(shape, lambda i: (0, 0), pipeline_mode=pl.Buffered(1))
    except TypeError:  # older JAX without BlockSpec.pipeline_mode: fall back to default.
        return pl.BlockSpec(shape, lambda i: (0, 0))


def prepare_decoder_params(w1, b1, w2, b2, *, mxu_dtype=jnp.bfloat16):
    """Pad + cast the weights ONCE (call at model-setup time, reuse across calls).

    w1: (L, H), b1: (H,) or (1, H), w2: (H, O), b2: (O,) or (1, O).
    Only the hidden/output (lane) dims are zero-padded to multiples of 128; the latent
    dim L is left as-is (the MXU pads the contraction dim internally at no HBM cost).
    Zero padding is exact: padded hidden cols give relu(0 + 0) = 0 and multiply zero
    rows of W2; padded output cols are 0 + 0 and are sliced away.
    """
    b1 = jnp.asarray(b1).reshape(1, -1)
    b2 = jnp.asarray(b2).reshape(1, -1)
    L, H = w1.shape
    O = w2.shape[1]
    assert w1.shape == (L, H) and b1.shape == (1, H)
    assert w2.shape == (H, O) and b2.shape == (1, O)

    Hp = _round_up(H, LANE)
    Op = _round_up(O, LANE)
    return dict(
        w1=_pad2(w1, L, Hp).astype(mxu_dtype),
        b1=_pad2(b1, 1, Hp).astype(jnp.float32),
        w2=_pad2(w2, Hp, Op).astype(mxu_dtype),
        b2=_pad2(b2, 1, Op).astype(jnp.float32),
        latent=L, hidden=H, output=O,
    )


# ----------------------------------------------------------------------------- forward

def decoder_apply(params, x, *, block_b=256, out_dtype=None):
    """Apply the decoder to x: (B, latent) -> (B, output), weights pre-padded via
    prepare_decoder_params.  x is passed to the kernel untouched (no pad, no copy)."""
    B, L = x.shape
    assert L == params["latent"], "latent dim mismatch"
    w1p, b1p, w2p, b2p = params["w1"], params["b1"], params["w2"], params["b2"]
    Hp, Op = w1p.shape[1], w2p.shape[1]
    O = params["output"]
    mm_dtype = w1p.dtype
    out_dtype = x.dtype if out_dtype is None else out_dtype

    # Batch tile: multiple of 8 sublanes, capped at block_b; for big batches also capped
    # so the grid has >= 4 tiles (keeps both v7x TensorCores busy under "parallel").
    Bp8 = _round_up(B, SUBLANE)
    TB = min(block_b, Bp8)
    if Bp8 > 2 * 128:
        TB = min(TB, max(128, _round_up(pl.cdiv(Bp8, 4), SUBLANE)))
    grid = (pl.cdiv(B, TB),)  # ragged last tile handled by Pallas (masked writeback)

    # Rough VMEM footprint: double-buffered x/out tiles + single-buffered weights/biases.
    vmem_est = (2 * TB * L * jnp.dtype(x.dtype).itemsize
                + 2 * TB * Op * jnp.dtype(out_dtype).itemsize
                + (L * Hp + Hp * Op) * jnp.dtype(mm_dtype).itemsize
                + (Hp + Op) * 4)
    cp_kwargs = dict(dimension_semantics=("parallel",))
    if vmem_est > 12 * 1024 * 1024:
        # Large tiles (block_b >= 512 on big batches): raise the scoped-VMEM limit above
        # v5e's 16 MiB default, with headroom, staying under v7x's 64 MiB physical VMEM.
        cp_kwargs["vmem_limit_bytes"] = int(min(2 * vmem_est, 48 * 1024 * 1024))

    out = pl.pallas_call(
        decoder_kernel,
        out_shape=jax.ShapeDtypeStruct((B, Op), out_dtype),
        grid=grid,
        in_specs=[
            # x: tiled over batch; last dim is the FULL latent dim (no lane padding).
            pl.BlockSpec((TB, L), lambda i: (i, 0)),
            _resident_spec((L, Hp)),    # W1 (resident, fetched once)
            _resident_spec((1, Hp)),    # b1
            _resident_spec((Hp, Op)),   # W2
            _resident_spec((1, Op)),    # b2
        ],
        out_specs=pl.BlockSpec((TB, Op), lambda i: (i, 0)),   # lane-dense output tile
        compiler_params=pltpu.CompilerParams(**cp_kwargs),
    )(x, w1p, b1p, w2p, b2p)

    # Strip output lane padding (rows already exact: out_shape has B rows).
    return out[:B, :O]


def decoder_forward(x, w1, b1, w2, b2, *, block_b=256, mxu_dtype=jnp.bfloat16,
                    out_dtype=None):
    """One-shot convenience wrapper (pads/casts weights per call; for repeated inference
    call prepare_decoder_params once and reuse with decoder_apply)."""
    params = prepare_decoder_params(w1, b1, w2, b2, mxu_dtype=mxu_dtype)
    return decoder_apply(params, x, block_b=block_b, out_dtype=out_dtype)


def reference_forward(x, w1, b1, w2, b2):
    h = jnp.maximum(x @ w1 + b1, 0.0)
    return h @ w2 + b2


# ----------------------------------------------------------------------------- test

if __name__ == "__main__":
    # Small shapes consistent with Decoder(latent_size, hidden_size, output_size).
    batch, latent, hidden, output = 8, 16, 32, 64

    key = jax.random.PRNGKey(0)
    kx, kw1, kb1, kw2, kb2, kxr = jax.random.split(key, 6)

    # PyTorch-style uniform(-1/sqrt(fan_in), 1/sqrt(fan_in)) init.
    bound1 = 1.0 / jnp.sqrt(latent)
    bound2 = 1.0 / jnp.sqrt(hidden)
    w1 = jax.random.uniform(kw1, (latent, hidden), jnp.float32, -bound1, bound1)
    b1 = jax.random.uniform(kb1, (1, hidden), jnp.float32, -bound1, bound1)
    w2 = jax.random.uniform(kw2, (hidden, output), jnp.float32, -bound2, bound2)
    b2 = jax.random.uniform(kb2, (1, output), jnp.float32, -bound2, bound2)

    x = jax.random.normal(kx, (batch, latent), jnp.float32)
    ref = reference_forward(x, w1, b1, w2, b2)

    # Recommended path: prepare (pad + bf16-cast) weights once, apply repeatedly.
    params_bf16 = prepare_decoder_params(w1, b1, w2, b2, mxu_dtype=jnp.bfloat16)
    out_bf16 = jax.block_until_ready(decoder_apply(params_bf16, x))
    assert out_bf16.shape == (batch, output)
    assert jnp.allclose(out_bf16, ref, atol=1e-1, rtol=1e-1), "bf16-MXU mismatch vs reference"

    # Full-f32 MXU path: tight tolerance.
    params_f32 = prepare_decoder_params(w1, b1, w2, b2, mxu_dtype=jnp.float32)
    out_f32 = jax.block_until_ready(decoder_apply(params_f32, x))
    assert out_f32.shape == (batch, output)
    assert jnp.allclose(out_f32, ref, atol=1e-5, rtol=1e-5), "f32 mismatch vs reference"

    # Ragged batch (B not a multiple of the tile) exercises cdiv grid + masked last tile.
    x_ragged = jax.random.normal(kxr, (13, latent), jnp.float32)
    ref_ragged = reference_forward(x_ragged, w1, b1, w2, b2)
    out_ragged = jax.block_until_ready(decoder_apply(params_f32, x_ragged))
    assert out_ragged.shape == (13, output)
    assert jnp.allclose(out_ragged, ref_ragged, atol=1e-5, rtol=1e-5), "ragged-batch mismatch"

    # bf16 output stream (halves the dominant writeback bytes on this mem-bound kernel).
    out_bf16_stream = jax.block_until_ready(
        decoder_apply(params_bf16, x, out_dtype=jnp.bfloat16))
    assert out_bf16_stream.dtype == jnp.bfloat16
    assert jnp.allclose(out_bf16_stream.astype(jnp.float32), ref, atol=1e-1, rtol=1e-1)

    print("KERNEL_OK")
</pallas_src>

<mosaic_0001>
module attributes {stable_mosaic.version = 11 : i64} {
  func.func @decoder_kernel(%arg0: i32, %arg1: memref<8x16xf32, #tpu.memory_space<vmem>>, %arg2: memref<16x128xbf16, #tpu.memory_space<vmem>>, %arg3: memref<1x128xf32, #tpu.memory_space<vmem>>, %arg4: memref<128x128xbf16, #tpu.memory_space<vmem>>, %arg5: memref<1x128xf32, #tpu.memory_space<vmem>>, %arg6: memref<8x128xf32, #tpu.memory_space<vmem>>) attributes {dimension_semantics = [#tpu.dimension_semantics<parallel>], iteration_bounds = array<i64: 1>, scalar_prefetch = 0 : i64, scratch_operands = 0 : i64, tpu.core_type = #tpu.core_type<tc>, window_params = [{transform_indices = @transform_0, window_bounds = array<i64: 8, 16>}, {pipeline_mode = #tpu.pipeline_mode<synchronous>, transform_indices = @transform_1, window_bounds = array<i64: 16, 128>}, {pipeline_mode = #tpu.pipeline_mode<synchronous>, transform_indices = @transform_2, window_bounds = array<i64: 1, 128>}, {pipeline_mode = #tpu.pipeline_mode<synchronous>, transform_indices = @transform_3, window_bounds = array<i64: 128, 128>}, {pipeline_mode = #tpu.pipeline_mode<synchronous>, transform_indices = @transform_4, window_bounds = array<i64: 1, 128>}, {transform_indices = @transform_5, window_bounds = array<i64: 8, 128>}]} {
    %c0 = arith.constant 0 : index
    %c0_0 = arith.constant 0 : index
    %0 = vector.load %arg1[%c0, %c0_0] : memref<8x16xf32, #tpu.memory_space<vmem>>, vector<8x16xf32>
    %1 = arith.truncf %0 : vector<8x16xf32> to vector<8x16xbf16>
    %c0_1 = arith.constant 0 : index
    %c0_2 = arith.constant 0 : index
    %2 = vector.load %arg2[%c0_1, %c0_2] : memref<16x128xbf16, #tpu.memory_space<vmem>>, vector<16x128xbf16>
    %cst = arith.constant dense<0.000000e+00> : vector<8x128xf32>
    %3 = tpu.matmul %1, %2, %cst {dimension_numbers = #tpu.dot_dimension_numbers<[1], [0], [0], [1], [0, 0, 1, 1], [], []>} : vector<8x16xbf16>, vector<16x128xbf16>, vector<8x128xf32> -> vector<8x128xf32>
    %c0_3 = arith.constant 0 : index
    %c0_4 = arith.constant 0 : index
    %4 = vector.load %arg3[%c0_3, %c0_4] : memref<1x128xf32, #tpu.memory_space<vmem>>, vector<1x128xf32>
    %5 = vector.broadcast %4 : vector<1x128xf32> to vector<8x128xf32>
    %6 = arith.addf %3, %5 : vector<8x128xf32>
    %cst_5 = arith.constant 0.000000e+00 : f32
    %7 = vector.broadcast %cst_5 : f32 to vector<8x128xf32>
    %8 = arith.maximumf %6, %7 : vector<8x128xf32>
    %9 = arith.truncf %8 : vector<8x128xf32> to vector<8x128xbf16>
    %c0_6 = arith.constant 0 : index
    %c0_7 = arith.constant 0 : index
    %10 = vector.load %arg4[%c0_6, %c0_7] : memref<128x128xbf16, #tpu.memory_space<vmem>>, vector<128x128xbf16>
    %cst_8 = arith.constant dense<0.000000e+00> : vector<8x128xf32>
    %11 = tpu.matmul %9, %10, %cst_8 {dimension_numbers = #tpu.dot_dimension_numbers<[1], [0], [0], [1], [0, 0, 1, 1], [], []>} : vector<8x128xbf16>, vector<128x128xbf16>, vector<8x128xf32> -> vector<8x128xf32>
    %c0_9 = arith.constant 0 : index
    %c0_10 = arith.constant 0 : index
    %12 = vector.load %arg5[%c0_9, %c0_10] : memref<1x128xf32, #tpu.memory_space<vmem>>, vector<1x128xf32>
    %13 = vector.broadcast %12 : vector<1x128xf32> to vector<8x128xf32>
    %14 = arith.addf %11, %13 : vector<8x128xf32>
    %c0_11 = arith.constant 0 : index
    %c0_12 = arith.constant 0 : index
    %15 = vector.load %arg6[%c0_11, %c0_12] : memref<8x128xf32, #tpu.memory_space<vmem>>, vector<8x128xf32>
    tpu.vector_store %arg6[%c0_11, %c0_12], %14 {strides = array<i32>} : memref<8x128xf32, #tpu.memory_space<vmem>>, vector<8x128xf32>,
    return
  }
  func.func @transform_0(%arg0: i32) -> (i32, i32) {
    %c0_i32 = arith.constant 0 : i32
    %c0_i32_0 = arith.constant 0 : i32
    return %arg0, %c0_i32 : i32, i32
  }
  func.func @transform_1(%arg0: i32) -> (i32, i32) {
    %c0_i32 = arith.constant 0 : i32
    %c0_i32_0 = arith.constant 0 : i32
    %c0_i32_1 = arith.constant 0 : i32
    return %c0_i32, %c0_i32_0 : i32, i32
  }
  func.func @transform_2(%arg0: i32) -> (i32, i32) {
    %c0_i32 = arith.constant 0 : i32
    %c0_i32_0 = arith.constant 0 : i32
    %c0_i32_1 = arith.constant 0 : i32
    return %c0_i32, %c0_i32_0 : i32, i32
  }
  func.func @transform_3(%arg0: i32) -> (i32, i32) {
    %c0_i32 = arith.constant 0 : i32
    %c0_i32_0 = arith.constant 0 : i32
    %c0_i32_1 = arith.constant 0 : i32
    return %c0_i32, %c0_i32_0 : i32, i32
  }
  func.func @transform_4(%arg0: i32) -> (i32, i32) {
    %c0_i32 = arith.constant 0 : i32
    %c0_i32_0 = arith.constant 0 : i32
    %c0_i32_1 = arith.constant 0 : i32
    return %c0_i32, %c0_i32_0 : i32, i32
  }
  func.func @transform_5(%arg0: i32) -> (i32, i32) {
    %c0_i32 = arith.constant 0 : i32
    %c0_i32_0 = arith.constant 0 : i32
    return %arg0, %c0_i32 : i32, i32
  }
}

</mosaic_0001>

<bundles_post_ra>
// kernel: tpu_custom_call.1
= control target key start
LH: loop header
LB: loop body
LE: loop exit
PB: predicated region body
PF: predicated region fallthrough
CT: control target
= control target key end

     0   :  { %10 = vsyncpa [#allocation3], 0  ;;  %s410_s0 = inlined_call_operand.hbm [shape: f32[8,16], index: 0, kind: input, shape index: {}]   ;;  %s411_s1 = inlined_call_operand.hbm [shape: bf16[16,128], index: 1, kind: input, shape index: {}]   ;;  %s412_s2 = inlined_call_operand.vmem [shape: f32[1,128], index: 2, kind: input, shape index: {}]   ;;  %s413_s3 = inlined_call_operand.hbm [shape: bf16[128,128], index: 3, kind: input, shape index: {}]   ;;  %s414_s4 = inlined_call_operand.vmem [shape: f32[1,128], index: 4, kind: input, shape index: {}]   ;;  %s415_s5 = inlined_call_operand.hbm [shape: f32[8,128], index: 5, kind: output, shape index: {}]  }
   0x1   :  { %11 = vsyncpa [#allocation6], 0  ;;  %s28_s20 = sshll.u32 %s411_s1, 4  ;;  %s29_s20 = int_to_ptr.hbm [resolvable:$true] %s28_s20 }
   0x2   :  { %12 = vsyncpa [#allocation4], 0  ;;  %s356_s21 = smov [#allocation5]   ;;  %s18_s25 = sshll.u32 %s410_s0, 4  ;;  %s19_s25 = int_to_ptr.hbm [resolvable:$true] %s18_s25 }
   0x3   :  { %s30_s22 = sshll.u32 %s356_s21, 4  ;;  %s357_s26 = smov 64   ;;  %s31_s22 = int_to_ptr.vmem [resolvable:$true] %s30_s22 }
   0x4   :  { %s358_s27 = smov 4   ;;  %s359_s28 = smov [#allocation2]  }
   0x5   :  { %36 = dma.hbm_to_vmem [thread:$0]  %s29_s20, 128, %s31_s22, [#allocation6], %s357_s26, %s357_s26, %s358_s27  }
   0x6   :  { %s20_s29 = sshll.u32 %s359_s28, 4  ;;  %s43_s7 = sshll.u32 %s413_s3, 4  ;;  %s21_s29 = int_to_ptr.vmem [resolvable:$true] %s20_s29  ;;  %s44_s7 = int_to_ptr.hbm [resolvable:$true] %s43_s7 }
   0x7   :  { %23 = dma.hbm_to_vmem [thread:$0]  %s19_s25, 128, %s21_s29, [#allocation3]  }
   0x8   :  { %s360_s1 = smov [#allocation7]  }
   0x9   :  { %s45_s8 = sshll.u32 %s360_s1, 4  ;;  %s46_s8 = int_to_ptr.vmem [resolvable:$true] %s45_s8 }
   0xa   :  { %51 = dma.hbm_to_vmem [thread:$0]  %s44_s7, 1024, %s46_s8, [#allocation6], %s357_s26, %s357_s26, %s358_s27  }
   0xb   :  { %350 = dma.done.wait [#allocation3], 128  }
   0xc   :  { %351 = vsyncadd [#allocation3], 4294967168 }
   0xd   :  { %352 = dma.done.wait [#allocation6], 1152  }
   0xe   :  { %353 = vsyncadd [#allocation6], 4294966144  ;;  %v237_v0 = vld [vmem:[#allocation5] sm:$0xff]  ;;  %v67_v1 = vld [vmem:[#allocation2] sm:$0xff]  ;;  %vm81_vm0 = vcmask 130048   ;;  %s361_s11 = smov [#allocation8]  }
   0xf   :  { %v245_v2 = vld [vmem:[#allocation7 + $0x38] sm:$0xff]  ;;  %v68_v3 = vpack.c.bf16 %v67_v1, %v67_v1  ;;  %92 = vmatpush.bf16.msra.mxu0 %v237_v0  ;;  %v244_v4 = vld [vmem:[#allocation7 + $0x30] sm:$0xff]  ;;  %v243_v5 = vld [vmem:[#allocation7 + $0x28] sm:$0xff]  ;;  %s187_s12 = sshll.u32 %s361_s11, 4  ;;  %s189_s15 = sshll.u32 %s415_s5, 4  ;;  %s188_s12 = int_to_ptr.vmem [resolvable:$true] %s187_s12  ;;  %s190_s15 = int_to_ptr.hbm [resolvable:$true] %s189_s15 }
  0x10   :  { %168 = vmatpush.bf16.msra.mxu1 %v245_v2  ;;  %v242_v6 = vld [vmem:[#allocation7 + $0x20] sm:$0xff]  ;;  %v241_v7 = vld [vmem:[#allocation7 + $0x18] sm:$0xff]  ;;  %v240_v8 = vld [vmem:[#allocation7 + $0x10] sm:$0xff] }
  0x11   :  { %v239_v9 = vld [vmem:[#allocation7 + $0x8] sm:$0xff]  ;;  %v238_v10 = vld [vmem:[#allocation7] sm:$0xff]  ;;  %v252_v11 = vld [vmem:[%s412_s2] ss:$0 sm:$0xff] }
  0x12   :  { %204 = vmatmul.msk.bf16.vlgmr.msra.gmra.mxu0 %vm81_vm0, %v68_v3  ;;  %v253_v17 = vld [vmem:[%s414_s4] ss:$0 sm:$0xff] }
  0x14   :  { %169 = vmatpush.bf16.msra.mxu1 %v244_v4 }
  0x18   :  { %170 = vmatpush.bf16.msra.mxu1 %v243_v5 }
  0x1c   :  { %171 = vmatpush.bf16.msra.mxu1 %v242_v6 }
  0x20   :  { %172 = vmatpush.bf16.msra.mxu1 %v241_v7 }
  0x24   :  { %173 = vmatpush.bf16.msra.mxu1 %v240_v8 }
  0x28   :  { %174 = vmatpush.bf16.msra.mxu1 %v239_v9 }
  0x2c   :  { %175 = vmatpush.bf16.msra.mxu1 %v238_v10 }
  0x8f   :  { %v94_v12 = vpop.f32.mrf.mxu0 }
  0x90   :  { %v95_v13 = vadd.f32 %v252_v11, %v94_v12 }
  0x92   :  { %v98_v14 = vmax.f32 %v95_v13, 0.0 }
  0x94   :  { %v99_v15 = vpack.c.bf16 %v98_v14, %v98_v14 }
  0x96   :  { %176 = vmatmul.bf16.vlgmr.msra.gmra.mxu1 %v99_v15 }
  0x97   :  { %v96_v16 = vpop.f32.mrf.mxu0 }
 0x113   :  { %v177_v18 = vpop.f32.mrf.mxu1 }
 0x114   :  { %v178_v19 = vadd.f32 %v253_v17, %v177_v18 }
 0x116   :  { %181 = vst [vmem:[#allocation8] sm:$0xff] %v178_v19 }
 0x117   :  { %192 = dma.vmem_to_hbm [thread:$0]  %s188_s12, 128, %s190_s15, [#allocation4]  }
 0x11b   :  { %v179_v20 = vpop.f32.mrf.mxu1 }
 0x11c   :  { %354 = dma.done.wait [#allocation4], 128  }
 0x11d   :  { %355 = vsyncadd [#allocation4], 4294967168 }
 0x11e   :  { %197 = vsyncpa [#allocation3], 1 }
 0x11f   :  { %198 = vsyncpa [#allocation6], 1 }
 0x120   :  { %199 = vsyncpa [#allocation4], 1 }

</bundles_post_ra>
